<compile_context>
chip_gen: v6e
topology: v6e:2x2x1
jax: 0.10.0
libtpu: 0.0.40
codegen_flags: <defaults>
</compile_context>

<pallas_src>
import math

import jax
import jax.numpy as jnp
from jax.experimental import pallas as pl
from jax.experimental.pallas import tpu as pltpu

_LANE = 128
_TARGET_TILE_BYTES = 2 * 1024 * 1024   # ~2 MiB of x per grid step (native dtype)
_MAX_HW_TILE = 16384                   # lane cap per spatial tile
_MIN_HW_TILE = 512                     # below this, just take the whole HW


def _pick_hw_tile(HW, C, itemsize):
    """Spatial tile (multiple of 128, or the full HW) targeting ~2 MiB DMAs."""
    if HW <= _MIN_HW_TILE:
        return HW                                   # full dim -> always legal
    hwt = _TARGET_TILE_BYTES // max(1, C * itemsize)
    hwt = max(_MIN_HW_TILE, min(hwt, _MAX_HW_TILE))
    hwt = (hwt // _LANE) * _LANE
    if hwt >= HW:
        return HW
    return hwt


def _make_kernel(C, HW, HWT, K, out_dtype):
    pad = K // 2
    # Padded channel length, rounded up to a sublane multiple.
    P = -(-(C + 2 * pad) // 8) * 8
    exact = (HW % HWT) == 0          # no tail tile -> no masking needed

    def kernel(params_ref, x_ref, o_ref, sum_ref, max_ref, fcp_ref):
        # params_ref (SMEM, f32): [alpha, beta, conv_bias, w0, ..., w_{K-1}]
        h = pl.program_id(1)

        # ---- init accumulators on the first spatial tile -------------------
        @pl.when(h == 0)
        def _():
            sum_ref[...] = jnp.zeros((C, 1), jnp.float32)
            max_ref[...] = jnp.full((C, 1), -jnp.inf, jnp.float32)

        # ---- single-pass partial sum / max over this spatial tile ----------
        x = x_ref[0].astype(jnp.float32)                      # (C, HWT)
        if exact:
            part_sum = jnp.sum(x, axis=1, keepdims=True)      # (C, 1)
            part_max = jnp.max(x, axis=1, keepdims=True)      # (C, 1)
        else:
            # Tail tile reads past HW; mask the out-of-bounds lanes.
            lane = jax.lax.broadcasted_iota(jnp.int32, (C, HWT), 1)
            valid = (h * HWT + lane) < HW
            part_sum = jnp.sum(jnp.where(valid, x, 0.0), axis=1, keepdims=True)
            part_max = jnp.max(jnp.where(valid, x, -jnp.inf), axis=1,
                               keepdims=True)
        sum_ref[...] += part_sum
        max_ref[...] = jnp.maximum(max_ref[...], part_max)

        # ---- finalize: blend, K-tap conv over channels, sigmoid ------------
        @pl.when(h == pl.num_programs(1) - 1)
        def _():
            alpha = params_ref[0]
            beta = params_ref[1]
            bias = params_ref[2]

            avg = sum_ref[...] * jnp.float32(1.0 / HW)          # (C, 1)
            mx = max_ref[...]                                   # (C, 1)
            fc = 0.5 * (mx + avg) + alpha * avg + beta * mx     # (C, 1)

            # Zero-padded copy of fc along the channel (sublane) axis, so the
            # Conv1d zero padding at the boundaries falls out of the shifts.
            fcp_ref[...] = jnp.zeros((P, 1), jnp.float32)
            fcp_ref[pl.ds(pad, C), :] = fc

            # Conv1d(1, 1, K, padding=K//2) == K shifted multiply-adds (VPU).
            out = jnp.zeros((C, 1), jnp.float32)
            for k in range(K):                                  # K tiny & static
                out = out + params_ref[3 + k] * fcp_ref[pl.ds(k, C), :]
            out = out + bias

            o_ref[0] = jax.nn.sigmoid(out).astype(out_dtype)

    return kernel


def channel_attention_ham(x, alpha, beta, conv_w, conv_b, *, max_hw_tile=None):
    """x: (B, C, H, W) in its native dtype (NCHW). Returns (B, C, 1, 1)."""
    B, C, H, W = x.shape
    HW = H * W
    K = int(conv_w.shape[0])

    x3 = x.reshape(B, C, HW)                      # free reshape, no dtype cast

    HWT = _pick_hw_tile(HW, C, x.dtype.itemsize)
    if max_hw_tile is not None:                   # test hook: force tiling
        HWT = min(HWT, int(max_hw_tile))
        if HWT < HW:
            HWT = max(_LANE, (HWT // _LANE) * _LANE)
        else:
            HWT = HW
    n_hw = pl.cdiv(HW, HWT)

    params = jnp.concatenate([
        jnp.asarray([alpha, beta, conv_b], dtype=jnp.float32),
        conv_w.astype(jnp.float32).reshape(-1),
    ])

    kernel = _make_kernel(C, HW, HWT, K, x.dtype)
    out = pl.pallas_call(
        kernel,
        out_shape=jax.ShapeDtypeStruct((B, C, 1), x.dtype),
        grid=(B, n_hw),
        in_specs=[
            pl.BlockSpec(memory_space=pltpu.MemorySpace.SMEM),   # params
            pl.BlockSpec((1, C, HWT), lambda b, h: (b, 0, h)),   # x tile
        ],
        out_specs=pl.BlockSpec((1, C, 1), lambda b, h: (b, 0, 0)),
        scratch_shapes=[
            pltpu.VMEM((C, 1), jnp.float32),                     # running sum
            pltpu.VMEM((C, 1), jnp.float32),                     # running max
            pltpu.VMEM((-(-(C + 2 * (K // 2)) // 8) * 8, 1),
                       jnp.float32),                             # padded fc
        ],
        compiler_params=pltpu.CompilerParams(
            dimension_semantics=("parallel", "arbitrary")),
    )(params, x3)
    return out.reshape(B, C, 1, 1)


def reference(x, alpha, beta, conv_w, conv_b):
    """Pure-JAX reference matching the PyTorch forward."""
    B, C, H, W = x.shape
    avg = x.astype(jnp.float32).mean(axis=(2, 3))      # (B, C)
    mx = x.astype(jnp.float32).max(axis=(2, 3))        # (B, C)
    fc = 0.5 * (mx + avg) + alpha * avg + beta * mx
    K = conv_w.shape[0]
    pad = K // 2
    fcp = jnp.pad(fc, ((0, 0), (pad, pad)))
    out = conv_b + sum(conv_w[k] * fcp[:, k:k + C] for k in range(K))
    return jax.nn.sigmoid(out).reshape(B, C, 1, 1).astype(x.dtype)


if __name__ == "__main__":
    # Small shapes consistent with the module: B=2, C=16.
    B, C = 2, 16

    # Kernel-size logic from __init__ (b=1, y=2).
    b_, y_ = 1, 2
    k_val = math.log(C, 2) / y_ + b_ / y_
    K = int(k_val) + 1 if int(k_val) % 2 == 0 else int(k_val)   # C=16 -> K=3

    key = jax.random.PRNGKey(0)
    kx, kw, kb, kx2 = jax.random.split(key, 4)

    # Deterministic parameter init (shapes from the module's __init__).
    alpha = jnp.float32(0.5)                      # nn.Parameter filled with 0.5
    beta = jnp.float32(0.5)                       # nn.Parameter filled with 0.5
    bound = 1.0 / math.sqrt(1 * K)                # Conv1d(1, 1, K) default-style init
    conv_w = jax.random.uniform(kw, (K,), jnp.float32, -bound, bound)
    conv_b = jax.random.uniform(kb, (), jnp.float32, -bound, bound)

    # 1) Single-tile path (H*W = 256 fits in one spatial tile).
    x = jax.random.normal(kx, (B, C, 16, 16), dtype=jnp.float32)
    out = jax.block_until_ready(channel_attention_ham(x, alpha, beta, conv_w, conv_b))
    ref = reference(x, alpha, beta, conv_w, conv_b)
    assert out.shape == (B, C, 1, 1), out.shape
    assert jnp.allclose(out, ref, atol=1e-5, rtol=1e-5), (
        f"max abs diff = {jnp.max(jnp.abs(out - ref))}")

    # 2) Multi-tile accumulator path (forced 128-lane tiles, HW % tile == 0).
    out2 = jax.block_until_ready(
        channel_attention_ham(x, alpha, beta, conv_w, conv_b, max_hw_tile=128))
    assert jnp.allclose(out2, ref, atol=1e-5, rtol=1e-5), (
        f"max abs diff = {jnp.max(jnp.abs(out2 - ref))}")

    # 3) Masked tail-tile path (HW = 324 is not a multiple of the 128 tile).
    x3 = jax.random.normal(kx2, (B, C, 18, 18), dtype=jnp.float32)
    out3 = jax.block_until_ready(
        channel_attention_ham(x3, alpha, beta, conv_w, conv_b, max_hw_tile=128))
    ref3 = reference(x3, alpha, beta, conv_w, conv_b)
    assert jnp.allclose(out3, ref3, atol=1e-5, rtol=1e-5), (
        f"max abs diff = {jnp.max(jnp.abs(out3 - ref3))}")

    print("KERNEL_OK")
</pallas_src>

<mosaic_0001>
module attributes {stable_mosaic.version = 11 : i64} {
  func.func @kernel(%arg0: i32, %arg1: i32, %arg2: memref<6xf32, #tpu.memory_space<smem>>, %arg3: memref<1x16x256xf32, #tpu.memory_space<vmem>>, %arg4: memref<1x16x1xf32, #tpu.memory_space<vmem>>, %arg5: memref<16x1xf32, #tpu.memory_space<vmem>>, %arg6: memref<16x1xf32, #tpu.memory_space<vmem>>, %arg7: memref<24x1xf32, #tpu.memory_space<vmem>>) attributes {dimension_semantics = [#tpu.dimension_semantics<parallel>, #tpu.dimension_semantics<arbitrary>], iteration_bounds = array<i64: 2, 1>, scalar_prefetch = 0 : i64, scratch_operands = 3 : i64, tpu.core_type = #tpu.core_type<tc>, window_params = [{transform_indices = @transform_0, window_bounds = array<i64: 6>}, {transform_indices = @transform_1, window_bounds = array<i64: 1, 16, 256>}, {transform_indices = @transform_2, window_bounds = array<i64: 1, 16, 1>}]} {
    %c0_i32 = arith.constant 0 : i32
    %0 = arith.cmpi eq, %arg1, %c0_i32 : i32
    %1 = arith.extui %0 : i1 to i32
    %c0_i32_0 = arith.constant 0 : i32
    %2 = arith.cmpi ne, %1, %c0_i32_0 : i32
    scf.if %2 {
      %cst_14 = arith.constant 0.000000e+00 : f32
      %18 = vector.broadcast %cst_14 : f32 to vector<16x1xf32>
      %c0_15 = arith.constant 0 : index
      %c0_16 = arith.constant 0 : index
      %19 = vector.load %arg5[%c0_15, %c0_16] : memref<16x1xf32, #tpu.memory_space<vmem>>, vector<16x1xf32>
      tpu.vector_store %arg5[%c0_15, %c0_16], %18 {strides = array<i32>} : memref<16x1xf32, #tpu.memory_space<vmem>>, vector<16x1xf32>,
      %cst_17 = arith.constant 0xFF800000 : f32
      %20 = vector.broadcast %cst_17 : f32 to vector<16x1xf32>
      %c0_18 = arith.constant 0 : index
      %c0_19 = arith.constant 0 : index
      %21 = vector.load %arg6[%c0_18, %c0_19] : memref<16x1xf32, #tpu.memory_space<vmem>>, vector<16x1xf32>
      tpu.vector_store %arg6[%c0_18, %c0_19], %20 {strides = array<i32>} : memref<16x1xf32, #tpu.memory_space<vmem>>, vector<16x1xf32>,
    } else {
    }
    %c0 = arith.constant 0 : index
    %c0_1 = arith.constant 0 : index
    %c0_2 = arith.constant 0 : index
    %3 = vector.load %arg3[%c0, %c0_1, %c0_2] : memref<1x16x256xf32, #tpu.memory_space<vmem>>, vector<1x16x256xf32>
    %4 = vector.shape_cast %3 : vector<1x16x256xf32> to vector<16x256xf32>
    %cst = arith.constant dense<0.000000e+00> : vector<16xf32>
    %5 = vector.multi_reduction <add>, %4, %cst [1] : vector<16x256xf32> to vector<16xf32>
    %6 = vector.shape_cast %5 : vector<16xf32> to vector<16x1xf32>
    %cst_3 = arith.constant dense<0xFF800000> : vector<16xf32>
    %7 = vector.multi_reduction <maximumf>, %4, %cst_3 [1] : vector<16x256xf32> to vector<16xf32>
    %8 = vector.shape_cast %7 : vector<16xf32> to vector<16x1xf32>
    %c0_4 = arith.constant 0 : index
    %c0_5 = arith.constant 0 : index
    %9 = vector.load %arg5[%c0_4, %c0_5] : memref<16x1xf32, #tpu.memory_space<vmem>>, vector<16x1xf32>
    %10 = arith.addf %9, %6 : vector<16x1xf32>
    %c0_6 = arith.constant 0 : index
    %c0_7 = arith.constant 0 : index
    %11 = vector.load %arg5[%c0_6, %c0_7] : memref<16x1xf32, #tpu.memory_space<vmem>>, vector<16x1xf32>
    tpu.vector_store %arg5[%c0_6, %c0_7], %10 {strides = array<i32>} : memref<16x1xf32, #tpu.memory_space<vmem>>, vector<16x1xf32>,
    %c0_8 = arith.constant 0 : index
    %c0_9 = arith.constant 0 : index
    %12 = vector.load %arg6[%c0_8, %c0_9] : memref<16x1xf32, #tpu.memory_space<vmem>>, vector<16x1xf32>
    %13 = arith.maximumf %12, %8 : vector<16x1xf32>
    %c0_10 = arith.constant 0 : index
    %c0_11 = arith.constant 0 : index
    %14 = vector.load %arg6[%c0_10, %c0_11] : memref<16x1xf32, #tpu.memory_space<vmem>>, vector<16x1xf32>
    tpu.vector_store %arg6[%c0_10, %c0_11], %13 {strides = array<i32>} : memref<16x1xf32, #tpu.memory_space<vmem>>, vector<16x1xf32>,
    %c0_i32_12 = arith.constant 0 : i32
    %15 = arith.cmpi eq, %arg1, %c0_i32_12 : i32
    %16 = arith.extui %15 : i1 to i32
    %c0_i32_13 = arith.constant 0 : i32
    %17 = arith.cmpi ne, %16, %c0_i32_13 : i32
    scf.if %17 {
      %c0_14 = arith.constant 0 : index
      %18 = memref.load %arg2[%c0_14] : memref<6xf32, #tpu.memory_space<smem>>
      %c1 = arith.constant 1 : index
      %19 = memref.load %arg2[%c1] : memref<6xf32, #tpu.memory_space<smem>>
      %c2 = arith.constant 2 : index
      %20 = memref.load %arg2[%c2] : memref<6xf32, #tpu.memory_space<smem>>
      %c0_15 = arith.constant 0 : index
      %c0_16 = arith.constant 0 : index
      %21 = vector.load %arg5[%c0_15, %c0_16] : memref<16x1xf32, #tpu.memory_space<vmem>>, vector<16x1xf32>
      %cst_17 = arith.constant 3.906250e-03 : f32
      %22 = vector.broadcast %cst_17 : f32 to vector<16x1xf32>
      %23 = arith.mulf %21, %22 : vector<16x1xf32>
      %c0_18 = arith.constant 0 : index
      %c0_19 = arith.constant 0 : index
      %24 = vector.load %arg6[%c0_18, %c0_19] : memref<16x1xf32, #tpu.memory_space<vmem>>, vector<16x1xf32>
      %25 = arith.addf %24, %23 : vector<16x1xf32>
      %cst_20 = arith.constant 5.000000e-01 : f32
      %26 = vector.broadcast %cst_20 : f32 to vector<16x1xf32>
      %27 = arith.mulf %26, %25 : vector<16x1xf32>
      %28 = vector.broadcast %18 : f32 to vector<16x1xf32>
      %29 = arith.mulf %28, %23 : vector<16x1xf32>
      %30 = arith.addf %27, %29 : vector<16x1xf32>
      %31 = vector.broadcast %19 : f32 to vector<16x1xf32>
      %32 = arith.mulf %31, %24 : vector<16x1xf32>
      %33 = arith.addf %30, %32 : vector<16x1xf32>
      %cst_21 = arith.constant 0.000000e+00 : f32
      %34 = vector.broadcast %cst_21 : f32 to vector<24x1xf32>
      %c0_22 = arith.constant 0 : index
      %c0_23 = arith.constant 0 : index
      %35 = vector.load %arg7[%c0_22, %c0_23] : memref<24x1xf32, #tpu.memory_space<vmem>>, vector<24x1xf32>
      tpu.vector_store %arg7[%c0_22, %c0_23], %34 {strides = array<i32>} : memref<24x1xf32, #tpu.memory_space<vmem>>, vector<24x1xf32>,
      %c1_24 = arith.constant 1 : index
      %c0_25 = arith.constant 0 : index
      %36 = vector.load %arg7[%c1_24, %c0_25] : memref<24x1xf32, #tpu.memory_space<vmem>>, vector<16x1xf32>
      tpu.vector_store %arg7[%c1_24, %c0_25], %33 {strides = array<i32>} : memref<24x1xf32, #tpu.memory_space<vmem>>, vector<16x1xf32>,
      %cst_26 = arith.constant 0.000000e+00 : f32
      %37 = vector.broadcast %cst_26 : f32 to vector<16x1xf32>
      %c3 = arith.constant 3 : index
      %38 = memref.load %arg2[%c3] : memref<6xf32, #tpu.memory_space<smem>>
      %c0_27 = arith.constant 0 : index
      %c0_28 = arith.constant 0 : index
      %39 = vector.load %arg7[%c0_27, %c0_28] : memref<24x1xf32, #tpu.memory_space<vmem>>, vector<16x1xf32>
      %40 = vector.broadcast %38 : f32 to vector<16x1xf32>
      %41 = arith.mulf %40, %39 : vector<16x1xf32>
      %42 = arith.addf %37, %41 : vector<16x1xf32>
      %c4 = arith.constant 4 : index
      %43 = memref.load %arg2[%c4] : memref<6xf32, #tpu.memory_space<smem>>
      %c1_29 = arith.constant 1 : index
      %c0_30 = arith.constant 0 : index
      %44 = vector.load %arg7[%c1_29, %c0_30] : memref<24x1xf32, #tpu.memory_space<vmem>>, vector<16x1xf32>
      %45 = vector.broadcast %43 : f32 to vector<16x1xf32>
      %46 = arith.mulf %45, %44 : vector<16x1xf32>
      %47 = arith.addf %42, %46 : vector<16x1xf32>
      %c5 = arith.constant 5 : index
      %48 = memref.load %arg2[%c5] : memref<6xf32, #tpu.memory_space<smem>>
      %c2_31 = arith.constant 2 : index
      %c0_32 = arith.constant 0 : index
      %49 = vector.load %arg7[%c2_31, %c0_32] : memref<24x1xf32, #tpu.memory_space<vmem>>, vector<16x1xf32>
      %50 = vector.broadcast %48 : f32 to vector<16x1xf32>
      %51 = arith.mulf %50, %49 : vector<16x1xf32>
      %52 = arith.addf %47, %51 : vector<16x1xf32>
      %53 = vector.broadcast %20 : f32 to vector<16x1xf32>
      %54 = arith.addf %52, %53 : vector<16x1xf32>
      %55 = arith.negf %54 : vector<16x1xf32>
      %56 = math.exp %55 : vector<16x1xf32>
      %cst_33 = arith.constant 1.000000e+00 : f32
      %57 = vector.broadcast %cst_33 : f32 to vector<16x1xf32>
      %58 = arith.addf %57, %56 : vector<16x1xf32>
      %59 = arith.divf %57, %58 : vector<16x1xf32>
      %c0_34 = arith.constant 0 : index
      %c0_35 = arith.constant 0 : index
      %c0_36 = arith.constant 0 : index
      %60 = vector.load %arg4[%c0_34, %c0_35, %c0_36] : memref<1x16x1xf32, #tpu.memory_space<vmem>>, vector<1x16x1xf32>
      %61 = vector.shape_cast %60 : vector<1x16x1xf32> to vector<16x1xf32>
      %62 = vector.shape_cast %59 : vector<16x1xf32> to vector<1x16x1xf32>
      tpu.vector_store %arg4[%c0_34, %c0_35, %c0_36], %62 {strides = array<i32>} : memref<1x16x1xf32, #tpu.memory_space<vmem>>, vector<1x16x1xf32>,
    } else {
    }
    return
  }
  func.func @transform_0(%arg0: i32, %arg1: i32) -> i32 {
    %c0_i32 = arith.constant 0 : i32
    %c0_i32_0 = arith.constant 0 : i32
    return %c0_i32 : i32
  }
  func.func @transform_1(%arg0: i32, %arg1: i32) -> (i32, i32, i32) {
    %c0_i32 = arith.constant 0 : i32
    %c0_i32_0 = arith.constant 0 : i32
    return %arg0, %c0_i32, %arg1 : i32, i32, i32
  }
  func.func @transform_2(%arg0: i32, %arg1: i32) -> (i32, i32, i32) {
    %c0_i32 = arith.constant 0 : i32
    %c0_i32_0 = arith.constant 0 : i32
    %c0_i32_1 = arith.constant 0 : i32
    return %arg0, %c0_i32, %c0_i32_0 : i32, i32, i32
  }
}

</mosaic_0001>

<bundles_post_ra>
// kernel: tpu_custom_call.1
= control target key start
LH: loop header
LB: loop body
LE: loop exit
PB: predicated region body
PF: predicated region fallthrough
CT: control target
= control target key end

     0   :  { %7 = vsyncpa [#allocation7], 0  ;;  %s739_s0 = inlined_call_operand.hbm [shape: f32[6], index: 0, kind: input, shape index: {}]   ;;  %s740_s1 = inlined_call_operand.hbm [shape: f32[2,16,256], index: 1, kind: input, shape index: {}]   ;;  %s741_s2 = inlined_call_operand.vmem [shape: f32[2,16,1], index: 2, kind: output, shape index: {}]  }
   0x1   :  { %8 = vsyncpa [#allocation6], 0 }
   0x2   :  { %10 = vsyncpa [#allocation6 + $0x1], 0  ;;  %s611_s9 = smov 0   ;;  %s613_s10 = smov 0  }
   0x3   :  { %s615_s11 = smov 0   ;;  %s617_s12 = smov 0  }
   0x4   :  { %s619_s13 = smov 0   ;;  %s621_s14 = smov 0  }
   0x5 LB: > { %s393_s15 = sadd.s32 4294967295, %s588_s14   ;;  %s58_s16 = sadd.s32 1, %s576_s11  ;;  %s588_s14 = sphi %s621_s14, %s16_s14   ;;  %s584_s13 = sphi %s619_s13, %s750_s13   ;;  %s580_s12 = sphi %s617_s12, %s749_s12   ;;  %s576_s11 = sphi %s615_s11, %s748_s11   ;;  %s572_s10 = sphi %s613_s10, %s747_s10   ;;  %s568_s9 = sphi %s611_s9, %s746_s9  }
   0x6   : > { %p65_p0 = scmp.ne.s32.totalorder %s576_s11, %s572_s10  ;;  %p66_p1 = scmp.eq.s32.totalorder %s588_s14, 0 }
   0x7   : > { %p71_p2 = scmp.ne.s32.totalorder %s572_s10, %s568_s9  ;;  %p645_p3 = scmp.eq.s32.totalorder %s393_s15, 0 }
   0x8   : > { %p67_p4 = por %p66_p1, %p65_p0  ;;  %p395_p5 = scmp.ge.s32.totalorder %s588_s14, 1 }
   0x9   : > { %p652_p6 = por %p645_p3, %p71_p2  ;;  %p108_p7 = scmp.lt.s32.totalorder %s588_s14, 3 }
   0xa   : > { %p432_p9 = scmp.lt.s32.totalorder %s588_s14, 2  ;;  %s28_s21 = sadd.s32 1, %s584_s13 }
   0xb   : > { %p657_p8 = pnand %p395_p5, %p108_p7  ;;  %p30_p13 = scmp.ge.s32.totalorder %s28_s21, 2 }
   0xc   : > { %p664_p11 = pnand %p432_p9, %p67_p4  ;;  %s130_s22 = sand.u32 1, %s576_s11  }
   0xd   : > { %p423_p10 = pneg %p657_p8  ;;  %s590_s23 = smov [#allocation5]  }
   0xe   : > { %s752_s21 = smov (%p30_p13, %s28_s21), 0  ;;  %s398_s26 = sshll.u32 %s130_s22, 5 }
   0xf   : > { %p424_p12 = pnand %p423_p10, %p645_p3  ;;  %s415_s27 = sshll.u32 %s584_s13, 9 }
  0x10   : > { %s53_s28 = ssub.s32 %s584_s13, %s752_s21  ;;  %s142_s3 = scalar_lea.hbm %s740_s1, %s415_s27 }
  0x11   : > { %426 = dma.hbm_to_smem (!%p424_p12), %s739_s0, 16, %s590_s23, [#allocation7]  }
  0x12   : > { %p56_p0 = scmp.eq.s32.totalorder %s53_s28, 0  ;;  %s134_s4 = scalar_lea.vmem [#allocation8], %s398_s26 }
  0x13   : > { %s143_s5 = sshll.u32 %s134_s4, 4  ;;  %s131_s7 = scalar_lea.sflag [#allocation6], %s130_s22  ;;  %s144_s5 = int_to_ptr.vmem [resolvable:$true] %s143_s5 }
  0x14   : > { %s684_s6 = scalar_select %p56_p0, %s576_s11, %s58_s16  }
  0x15   : > { %p508_p1 = pneg %p664_p11  ;;  %s519_s8 = scalar_lea.vmem %s144_s5, 512 }
  0x16   : > { %p520_p2 = scmp.ne.s32.totalorder %s144_s5, %s519_s8  ;;  %s591_s9 = smov [#allocation8]  }
  0x17   : > { %s524_s15 = sshll.u32 %s591_s9, 4  ;;  %s525_s15 = int_to_ptr.vmem [resolvable:$false] %s524_s15 }
  0x18   : > { %p522_p4 = pnand %p520_p2, %p508_p1  ;;  %s526_s23 = scalar_lea.vmem %s525_s15, 1024 }
  0x19   : > { %p527_p7 = scmp.lt.s32.totalorder %s144_s5, %s525_s15  ;;  %p528_p9 = scmp.lt.s32.totalorder %s526_s23, %s519_s8 }
  0x1a   : > { %p523_p5 = pneg %p522_p4 }
  0x1b   : > { %p529_p10 = por %p528_p9, %p527_p7 }
  0x1d   : > { %p530_p12 = pnand %p529_p10, %p523_p5 }
  0x1f   : > { %533 = shalt.err (!%p530_p12)
}
  0x20   : > { %s592_s24 = smov 256   ;;  %s593_s16 = smov 16  }
  0x21   : > { %430 = dma.hbm_to_vmem [thread:$0]  (!%p664_p11), %s142_s3, 512, %s144_s5, %s131_s7, %s592_s24, %s592_s24, %s593_s16  }
  0x22   : > { %155 = sbr.rel (%p657_p8) target bundleno = 261 (0x105), region = 28 }
  0x27   : > { %559 = dma.done.wait (%p645_p3), [#allocation7], 16  }
  0x28   : > { %561 = vsyncadd (%p645_p3), [#allocation7], 4294967280  ;;  %s161_s22 = sand.u32 1, %s572_s10  }
  0x29   : > { %s403_s25 = sshll.u32 %s161_s22, 5  ;;  %s162_s26 = scalar_lea.sflag [#allocation6], %s161_s22 }
  0x2a   : > { %s165_s27 = scalar_lea.vmem [#allocation8], %s403_s25 }
  0x2b   : > { %563 = dma.done.wait (%p652_p6), %s162_s26, 512  }
  0x2c   : > { %565 = vsyncadd (%p652_p6), %s162_s26, 4294966784 }
  0x2d   : > { %170 = sfence }
  0x2e   : > { %v202_v0 = vld [vmem:[%s165_s27] sm:$0xff]  ;;  %v203_v1 = vld [vmem:[%s165_s27 + $0x8] sm:$0xff]  ;;  %v204_v2 = vld [vmem:[%s165_s27 + $0x10] sm:$0xff]  ;;  %vm197_vm0 = vcmask 7168   ;;  %v594_v8 = vmov 0.0   ;;  %v595_v9 = vmov -inf  }
  0x2f   : > { %v206_v3 = vadd.f32 %v203_v1, %v202_v0  ;;  %v212_v4 = vmax.f32 %v202_v0, %v203_v1  ;;  %v205_v5 = vld [vmem:[%s165_s27 + $0x18] sm:$0xff]  ;;  %198 = vst.msk [vmem:[#allocation2] sm:$0xff] %vm197_vm0, %v594_v8  ;;  %257 = vst.msk [vmem:[#allocation4] sm:$0xff] %vm197_vm0, %v594_v8  ;;  %s234_s17 = sld [smem:[#allocation5]]  ;;  %p188_p3 = scmp.lt.s32.totalorder %s580_s12, 1 }
  0x30   : > { %v209_v6 = vadd.f32 %v205_v5, %v204_v2  ;;  %v215_v7 = vmax.f32 %v204_v2, %v205_v5  ;;  %258 = vst.msk [vmem:[#allocation4 + $0x8] sm:$0xff] %vm197_vm0, %v594_v8  ;;  %259 = vst.msk [vmem:[#allocation4 + $0x10] sm:$0xff] %vm197_vm0, %v594_v8  ;;  %s406_s18 = sld [smem:[#allocation5 + $0x1]] }
  0x31   : > { %207 = vadd.xlane.f32.xlu0 %v206_v3  ;;  %213 = vmax.xlane.f32.xlu1 %v212_v4  ;;  %199 = vst.msk [vmem:[#allocation2 + $0x8] sm:$0xff] %vm197_vm0, %v594_v8  ;;  %200 = vst.msk [vmem:[#allocation3] sm:$0xff] %vm197_vm0, %v595_v9  ;;  %s408_s19 = sld [smem:[#allocation5 + $0x3]]  ;;  %s754_s12 = smov (!%p188_p3, %s580_s12), 1 }
  0x32   : > { %201 = vst.msk [vmem:[#allocation3 + $0x8] sm:$0xff] %vm197_vm0, %v595_v9  ;;  %s409_s20 = sld [smem:[#allocation5 + $0x4]]  ;;  %s416_s30 = sshll.u32 %s754_s12, 4 }
  0x33   : > { %s410_s28 = sld [smem:[#allocation5 + $0x5]]  ;;  %s192_s5 = scalar_lea.vmem %s741_s2, %s416_s30 }
  0x34   : > { %s407_s29 = sld [smem:[#allocation5 + $0x2]] }
  0x35   : > { %210 = vadd.xlane.f32.xlu0 %v209_v6  ;;  %216 = vmax.xlane.f32.xlu1 %v215_v7  ;;  %v247_v25 = vstv %s234_s17 }
  0x36   : > { %v218_v10 = vld [vmem:[#allocation2] sm:$0xff]  ;;  %v252_v27 = vstv %s406_s18 }
  0x37   : > { %v265_v42 = vstv %s408_s19 }
  0x38   : > { %v225_v11 = vld [vmem:[#allocation3] sm:$0xff]  ;;  %v219_v16 = vld [vmem:[#allocation2 + $0x8] sm:$0xff]  ;;  %v273_v43 = vstv %s409_s20 }
  0x39   : > { %v226_v17 = vld [vmem:[#allocation3 + $0x8] sm:$0xff]  ;;  %v281_v48 = vstv %s410_s28 }
  0x3a   : > { %v286_v57 = vstv %s407_s29 }
  0xba   : > { %v208_v12 = vpop.xlane.xlu0 %207  ;;  %v214_v13 = vpop.xlane.xlu1 %213 }
  0xbb   : > { %v220_v14 = vadd.f32 %v218_v10, %v208_v12  ;;  %v227_v15 = vmax.f32 %v225_v11, %v214_v13 }
  0xbd   : > { %223 = vst.msk [vmem:[#allocation2] sm:$0xff] %vm197_vm0, %v220_v14  ;;  %229 = vst.msk [vmem:[#allocation3] sm:$0xff] %vm197_vm0, %v227_v15 }
  0xbe   : > { %v211_v18 = vpop.xlane.xlu0 %210  ;;  %v217_v19 = vpop.xlane.xlu1 %216 }
  0xbf   : > { %v221_v20 = vadd.f32 %v219_v16, %v211_v18  ;;  %v228_v21 = vmax.f32 %v226_v17, %v217_v19 }
  0xc1   : > { %224 = vst.msk [vmem:[#allocation2 + $0x8] sm:$0xff] %vm197_vm0, %v221_v20  ;;  %230 = vst.msk [vmem:[#allocation3 + $0x8] sm:$0xff] %vm197_vm0, %v228_v21 }
  0xc4   : > { %v237_v22 = vld [vmem:[#allocation2] sm:$0xff]  ;;  %v241_v23 = vld [vmem:[#allocation3] sm:$0xff] }
  0xc5   : > { %v239_v24 = vmul.f32 0.00390625, %v237_v22  ;;  %v253_v34 = vmul.f32 %v252_v27, %v241_v23 }
  0xc7   : > { %v243_v26 = vadd.f32 %v241_v23, %v239_v24  ;;  %v248_v30 = vmul.f32 %v247_v25, %v239_v24 }
  0xc8   : > { %v238_v28 = vld [vmem:[#allocation2 + $0x8] sm:$0xff]  ;;  %v242_v29 = vld [vmem:[#allocation3 + $0x8] sm:$0xff] }
  0xc9   : > { %v245_v31 = vmul.f32 0.5, %v243_v26  ;;  %v240_v32 = vmul.f32 0.00390625, %v238_v28  ;;  %v254_v40 = vmul.f32 %v252_v27, %v242_v29 }
  0xcb   : > { %v250_v33 = vadd.f32 %v248_v30, %v245_v31  ;;  %v244_v35 = vadd.f32 %v242_v29, %v240_v32  ;;  %v249_v37 = vmul.f32 %v247_v25, %v240_v32 }
  0xcd   : > { %v255_v36 = vadd.f32 %v253_v34, %v250_v33  ;;  %v246_v38 = vmul.f32 0.5, %v244_v35 }
  0xcf   : > { %260 = vst.msk [vmem:[#allocation4 + $0x1] sm:$0xff] %vm197_vm0, %v255_v36  ;;  %v251_v39 = vadd.f32 %v249_v37, %v246_v38 }
  0xd1   : > { %v256_v41 = vadd.f32 %v254_v40, %v251_v39 }
  0xd3   : > { %261 = vst.msk [vmem:[#allocation4 + $0x9] sm:$0xff] %vm197_vm0, %v256_v41 }
  0xd6   : > { %v263_v44 = vld [vmem:[#allocation4] sm:$0xff] }
  0xd7   : > { %v271_v45 = vld [vmem:[#allocation4 + $0x1] sm:$0xff]  ;;  %v266_v46 = vmul.f32 %v265_v42, %v263_v44 }
  0xd8   : > { %v274_v47 = vmul.f32 %v273_v43, %v271_v45 }
  0xda   : > { %v264_v49 = vld [vmem:[#allocation4 + $0x8] sm:$0xff]  ;;  %v276_v52 = vadd.f32 %v274_v47, %v266_v46 }
  0xdb   : > { %v272_v50 = vld [vmem:[#allocation4 + $0x9] sm:$0xff]  ;;  %v267_v53 = vmul.f32 %v265_v42, %v264_v49 }
  0xdc   : > { %v279_v51 = vld [vmem:[#allocation4 + $0x2] sm:$0xff]  ;;  %v275_v54 = vmul.f32 %v273_v43, %v272_v50  ;;  %v280_v55 = vld [vmem:[#allocation4 + $0xa] sm:$0xff] }
  0xdd   : > { %v282_v56 = vmul.f32 %v281_v48, %v279_v51  ;;  %v283_v59 = vmul.f32 %v281_v48, %v280_v55 }
  0xde   : > { %v277_v58 = vadd.f32 %v275_v54, %v267_v53 }
  0xdf   : > { %v284_v60 = vadd.f32 %v282_v56, %v276_v52 }
  0xe0   : > { %v285_v61 = vadd.f32 %v283_v59, %v277_v58 }
  0xe1   : > { %v287_v62 = vadd.f32 %v286_v57, %v284_v60 }
  0xe2   : > { %v288_v63 = vadd.f32 %v286_v57, %v285_v61 }
  0xe3   : > { %v411_v0 = vmul.f32 -1.442695, %v287_v62 }
  0xe4   : > { %v412_v1 = vmul.f32 -1.442695, %v288_v63 }
  0xe5   : > { %487 = vpow2.f32 %v411_v0 }
  0xe6   : > { %489 = vpow2.f32 %v412_v1 }
  0xf2   : > { %v488_v2 = vpop.eup %487 }
  0xf3   : > { %v295_v3 = vadd.f32 1.0, %v488_v2  ;;  %v490_v4 = vpop.eup %489 }
  0xf4   : > { %v296_v5 = vadd.f32 1.0, %v490_v4 }
  0xf5   : > { %491 = vrcp.f32 %v295_v3 }
  0xf6   : > { %493 = vrcp.f32 %v296_v5 }
 0x102   : > { %v492_v6 = vpop.eup %491 }
 0x103   : > { %301 = vst.msk [vmem:[%s192_s5] sm:$0xff] %vm197_vm0, %v492_v6  ;;  %v494_v7 = vpop.eup %493 }
 0x104   : > { %302 = vst.msk [vmem:[%s192_s5 + $0x8] sm:$0xff] %vm197_vm0, %v494_v7 }
 0x105 PF: > { %s16_s14 = sadd.s32 1, %s588_s14   ;;  %s746_s9 = smov %s572_s10 }
 0x106   : > { %p13_p6 = scmp.ge.s32.totalorder %s16_s14, 4   ;;  %s747_s10 = smov %s576_s11 }
 0x107   : > { %s748_s11 = smov %s684_s6  ;;  %s749_s12 = smov %s584_s13 }
 0x108   : > { %s750_s13 = smov %s752_s21  ;;  %15 = sbr.rel (!%p13_p6) target bundleno = 5 (0x5), region = 81 }
 0x10d   :  { %324 = vsyncpa [#allocation6], 1 }
 0x10e   :  { %326 = vsyncpa [#allocation6 + $0x1], 1 }
 0x10f   :  { %327 = vsyncpa [#allocation7], 1 }
 0x110   :  { %329 = vsyncpa [#allocation7 + $0x1], 1 }

</bundles_post_ra>
